<compile_context>
chip_gen: v7x
topology: tpu7x:2x2x1
jax: 0.10.0
libtpu: 0.0.40
codegen_flags: <defaults>
</compile_context>

<pallas_src>
import functools

import jax
import jax.numpy as jnp
from jax import lax
from jax.experimental import pallas as pl
from jax.experimental.pallas import tpu as pltpu

EPS = 1e-5


def _mlp_kernel(x_ref, w1_ref, b1_ref, w2_ref, b2_ref, w3_ref, b3_ref, out_ref):
    # In-kernel bf16 cast of x (VPU has huge slack; avoids a separate HBM cast pass).
    x = x_ref[...].astype(jnp.bfloat16)

    # Block 1: Linear -> ReLU (BN1 folded into W2/b2; Dropout identity in eval).
    h = jnp.dot(x, w1_ref[...], preferred_element_type=jnp.float32)
    h = jnp.maximum(h + b1_ref[...], 0.0)                       # f32 epilogue (v5e-safe)

    # Block 2: Linear -> ReLU (BN2 folded into W3/b3).
    h = jnp.dot(h.astype(jnp.bfloat16), w2_ref[...], preferred_element_type=jnp.float32)
    h = jnp.maximum(h + b2_ref[...], 0.0)

    # Head: Linear(64, num_classes).
    logits = jnp.dot(h.astype(jnp.bfloat16), w3_ref[...], preferred_element_type=jnp.float32)
    out_ref[...] = (logits + b3_ref[...]).astype(out_ref.dtype)


def _round_up(n, m):
    return ((n + m - 1) // m) * m


def prepare_params(params, compute_dtype=jnp.bfloat16):
    """One-time (parameter-load time) eval-mode BN folding + bf16 weight cast.

    Folds BatchNorm into the *following* Linear (module order is Linear->ReLU->BN->Dropout):
      z = ReLU(xW1+b1)*scale + shift ; zW2+b2 = ReLU(xW1+b1) @ (diag(scale)W2) + (shift@W2+b2)
    Folding is done in f32, then weights are cast to bf16 (f32 biases kept).
    """
    scale1 = params["g1"] * lax.rsqrt(params["v1"] + EPS)       # (1, h1)
    shift1 = params["be1"] - params["m1"] * scale1
    scale2 = params["g2"] * lax.rsqrt(params["v2"] + EPS)       # (1, h2)
    shift2 = params["be2"] - params["m2"] * scale2

    w1 = params["w1"]
    b1 = params["b1"]
    w2 = params["w2"] * scale1.T                                 # diag(scale1) @ W2
    b2 = params["b2"] + shift1 @ params["w2"]
    w3 = params["w3"] * scale2.T                                 # diag(scale2) @ W3
    b3 = params["b3"] + shift2 @ params["w3"]

    return dict(
        w1=w1.astype(compute_dtype), b1=b1.astype(jnp.float32),
        w2=w2.astype(compute_dtype), b2=b2.astype(jnp.float32),
        w3=w3.astype(compute_dtype), b3=b3.astype(jnp.float32),
    )


@functools.partial(jax.jit, static_argnames=("block_batch",))
def simple_nn_classifier_forward(x, folded_params, *, block_batch=4096):
    """x: [B, D_in] float32.  folded_params: dict from prepare_params (BN already folded)."""
    p = folded_params
    B, D_in = x.shape
    h1 = p["w1"].shape[1]
    h2 = p["w2"].shape[1]
    num_classes = p["w3"].shape[1]

    # Batch tile: multiple of 16, capped at block_batch, and <= ceil(B/2) so the grid has
    # >= 2 steps (lets the "parallel" batch axis shard across v7x's 2 TensorCores).
    tb = min(block_batch, max(16, _round_up(pl.cdiv(B, 2), 16)))
    grid = (pl.cdiv(B, tb),)          # ragged last block: OOB output rows masked by Pallas

    def const_spec(shape):
        return pl.BlockSpec(shape, lambda i: (0, 0))             # VMEM-resident parameters

    flops = 2 * B * (D_in * h1 + h1 * h2 + h2 * num_classes)
    bytes_accessed = (
        x.size * x.dtype.itemsize
        + B * num_classes * 4
        + sum(v.size * v.dtype.itemsize for v in p.values())
    )

    out = pl.pallas_call(
        _mlp_kernel,
        out_shape=jax.ShapeDtypeStruct((B, num_classes), jnp.float32),
        grid=grid,
        in_specs=[
            pl.BlockSpec((tb, D_in), lambda i: (i, 0)),          # x: f32, tiled over batch
            const_spec((D_in, h1)), const_spec((1, h1)),
            const_spec((h1, h2)), const_spec((1, h2)),
            const_spec((h2, num_classes)), const_spec((1, num_classes)),
        ],
        out_specs=pl.BlockSpec((tb, num_classes), lambda i: (i, 0)),
        compiler_params=pltpu.CompilerParams(
            dimension_semantics=("parallel",),
        ),
        cost_estimate=pl.CostEstimate(
            flops=flops, transcendentals=0, bytes_accessed=bytes_accessed),
    )(x, p["w1"], p["b1"], p["w2"], p["b2"], p["w3"], p["b3"])

    return out


def init_params(key, input_dim, hidden_dims=(128, 64), num_classes=2):
    """Parameter init mimicking the PyTorch module's shapes (Linear weights stored [in, out])."""
    keys = jax.random.split(key, 16)
    h1, h2 = hidden_dims

    def lin(kw, kb, d_in, d_out):
        bound = 1.0 / jnp.sqrt(d_in)
        w = jax.random.uniform(kw, (d_in, d_out), jnp.float32, -bound, bound)
        b = jax.random.uniform(kb, (1, d_out), jnp.float32, -bound, bound)
        return w, b

    w1, b1 = lin(keys[0], keys[1], input_dim, h1)
    w2, b2 = lin(keys[2], keys[3], h1, h2)
    w3, b3 = lin(keys[4], keys[5], h2, num_classes)

    return dict(
        w1=w1, b1=b1,
        g1=1.0 + 0.1 * jax.random.normal(keys[6], (1, h1), jnp.float32),
        be1=0.1 * jax.random.normal(keys[7], (1, h1), jnp.float32),
        m1=0.1 * jax.random.normal(keys[8], (1, h1), jnp.float32),
        v1=jnp.abs(jax.random.normal(keys[9], (1, h1), jnp.float32)) + 0.5,
        w2=w2, b2=b2,
        g2=1.0 + 0.1 * jax.random.normal(keys[10], (1, h2), jnp.float32),
        be2=0.1 * jax.random.normal(keys[11], (1, h2), jnp.float32),
        m2=0.1 * jax.random.normal(keys[12], (1, h2), jnp.float32),
        v2=jnp.abs(jax.random.normal(keys[13], (1, h2), jnp.float32)) + 0.5,
        w3=w3, b3=b3,
    )


def reference_forward(x, params):
    """Pure-JAX f32 reference with the unfolded eval-mode BatchNorm (module semantics)."""
    h = jnp.maximum(x @ params["w1"] + params["b1"], 0.0)
    h = (h - params["m1"]) / jnp.sqrt(params["v1"] + EPS) * params["g1"] + params["be1"]
    h = jnp.maximum(h @ params["w2"] + params["b2"], 0.0)
    h = (h - params["m2"]) / jnp.sqrt(params["v2"] + EPS) * params["g2"] + params["be2"]
    return h @ params["w3"] + params["b3"]


if __name__ == "__main__":
    key = jax.random.PRNGKey(0)
    k_x, k_p = jax.random.split(key)

    batch, input_dim = 512, 32
    x = jax.random.normal(k_x, (batch, input_dim), jnp.float32)
    params = init_params(k_p, input_dim, hidden_dims=(128, 64), num_classes=2)

    # Fold BN / cast weights once at parameter-load time (hoisted out of the per-call jit).
    folded = prepare_params(params)

    # Main run: tb = 256, grid = (2,) -> both v7x TensorCores busy; no wrapper cast/pad of x.
    out = jax.block_until_ready(simple_nn_classifier_forward(x, folded))
    ref = reference_forward(x, params)
    assert out.shape == (batch, 2), out.shape
    # bf16 weights / in-kernel bf16 x with f32 accumulation -> loosened tolerance vs. f32 ref.
    assert jnp.allclose(out, ref, atol=5e-2, rtol=5e-2), \
        f"mismatch: max abs err {jnp.max(jnp.abs(out - ref))}"

    # Ragged-batch path: B=100 is not a multiple of the 64-row tile -> partial last block,
    # no jnp.pad copy; masked OOB output rows never reach HBM.
    x_small = x[:100]
    out_small = jax.block_until_ready(simple_nn_classifier_forward(x_small, folded))
    assert out_small.shape == (100, 2), out_small.shape
    assert jnp.allclose(out_small, ref[:100], atol=5e-2, rtol=5e-2), \
        f"mismatch (small batch): max abs err {jnp.max(jnp.abs(out_small - ref[:100]))}"

    print("KERNEL_OK")
</pallas_src>

<mosaic_0001>
module attributes {stable_mosaic.version = 11 : i64} {
  func.func @_mlp_kernel(%arg0: i32, %arg1: memref<256x32xf32, #tpu.memory_space<vmem>>, %arg2: memref<32x128xbf16, #tpu.memory_space<vmem>>, %arg3: memref<1x128xf32, #tpu.memory_space<vmem>>, %arg4: memref<128x64xbf16, #tpu.memory_space<vmem>>, %arg5: memref<1x64xf32, #tpu.memory_space<vmem>>, %arg6: memref<64x2xbf16, #tpu.memory_space<vmem>>, %arg7: memref<1x2xf32, #tpu.memory_space<vmem>>, %arg8: memref<256x2xf32, #tpu.memory_space<vmem>>) attributes {dimension_semantics = [#tpu.dimension_semantics<parallel>], iteration_bounds = array<i64: 2>, scalar_prefetch = 0 : i64, scratch_operands = 0 : i64, tpu.core_type = #tpu.core_type<tc>, window_params = [{transform_indices = @transform_0, window_bounds = array<i64: 256, 32>}, {pipeline_mode = #tpu.pipeline_mode<synchronous>, transform_indices = @transform_1, window_bounds = array<i64: 32, 128>}, {pipeline_mode = #tpu.pipeline_mode<synchronous>, transform_indices = @transform_2, window_bounds = array<i64: 1, 128>}, {pipeline_mode = #tpu.pipeline_mode<synchronous>, transform_indices = @transform_3, window_bounds = array<i64: 128, 64>}, {pipeline_mode = #tpu.pipeline_mode<synchronous>, transform_indices = @transform_4, window_bounds = array<i64: 1, 64>}, {pipeline_mode = #tpu.pipeline_mode<synchronous>, transform_indices = @transform_5, window_bounds = array<i64: 64, 2>}, {pipeline_mode = #tpu.pipeline_mode<synchronous>, transform_indices = @transform_6, window_bounds = array<i64: 1, 2>}, {transform_indices = @transform_7, window_bounds = array<i64: 256, 2>}]} {
    %c0 = arith.constant 0 : index
    %c0_0 = arith.constant 0 : index
    %0 = vector.load %arg1[%c0, %c0_0] : memref<256x32xf32, #tpu.memory_space<vmem>>, vector<256x32xf32>
    %1 = arith.truncf %0 : vector<256x32xf32> to vector<256x32xbf16>
    %c0_1 = arith.constant 0 : index
    %c0_2 = arith.constant 0 : index
    %2 = vector.load %arg2[%c0_1, %c0_2] : memref<32x128xbf16, #tpu.memory_space<vmem>>, vector<32x128xbf16>
    %cst = arith.constant dense<0.000000e+00> : vector<256x128xf32>
    %3 = tpu.matmul %1, %2, %cst {dimension_numbers = #tpu.dot_dimension_numbers<[1], [0], [0], [1], [0, 0, 1, 1], [], []>} : vector<256x32xbf16>, vector<32x128xbf16>, vector<256x128xf32> -> vector<256x128xf32>
    %c0_3 = arith.constant 0 : index
    %c0_4 = arith.constant 0 : index
    %4 = vector.load %arg3[%c0_3, %c0_4] : memref<1x128xf32, #tpu.memory_space<vmem>>, vector<1x128xf32>
    %5 = vector.broadcast %4 : vector<1x128xf32> to vector<256x128xf32>
    %6 = arith.addf %3, %5 : vector<256x128xf32>
    %cst_5 = arith.constant 0.000000e+00 : f32
    %7 = vector.broadcast %cst_5 : f32 to vector<256x128xf32>
    %8 = arith.maximumf %6, %7 : vector<256x128xf32>
    %9 = arith.truncf %8 : vector<256x128xf32> to vector<256x128xbf16>
    %c0_6 = arith.constant 0 : index
    %c0_7 = arith.constant 0 : index
    %10 = vector.load %arg4[%c0_6, %c0_7] : memref<128x64xbf16, #tpu.memory_space<vmem>>, vector<128x64xbf16>
    %cst_8 = arith.constant dense<0.000000e+00> : vector<256x64xf32>
    %11 = tpu.matmul %9, %10, %cst_8 {dimension_numbers = #tpu.dot_dimension_numbers<[1], [0], [0], [1], [0, 0, 1, 1], [], []>} : vector<256x128xbf16>, vector<128x64xbf16>, vector<256x64xf32> -> vector<256x64xf32>
    %c0_9 = arith.constant 0 : index
    %c0_10 = arith.constant 0 : index
    %12 = vector.load %arg5[%c0_9, %c0_10] : memref<1x64xf32, #tpu.memory_space<vmem>>, vector<1x64xf32>
    %13 = vector.broadcast %12 : vector<1x64xf32> to vector<256x64xf32>
    %14 = arith.addf %11, %13 : vector<256x64xf32>
    %cst_11 = arith.constant 0.000000e+00 : f32
    %15 = vector.broadcast %cst_11 : f32 to vector<256x64xf32>
    %16 = arith.maximumf %14, %15 : vector<256x64xf32>
    %17 = arith.truncf %16 : vector<256x64xf32> to vector<256x64xbf16>
    %c0_12 = arith.constant 0 : index
    %c0_13 = arith.constant 0 : index
    %18 = vector.load %arg6[%c0_12, %c0_13] : memref<64x2xbf16, #tpu.memory_space<vmem>>, vector<64x2xbf16>
    %cst_14 = arith.constant dense<0.000000e+00> : vector<256x2xf32>
    %19 = tpu.matmul %17, %18, %cst_14 {dimension_numbers = #tpu.dot_dimension_numbers<[1], [0], [0], [1], [0, 0, 1, 1], [], []>} : vector<256x64xbf16>, vector<64x2xbf16>, vector<256x2xf32> -> vector<256x2xf32>
    %c0_15 = arith.constant 0 : index
    %c0_16 = arith.constant 0 : index
    %20 = vector.load %arg7[%c0_15, %c0_16] : memref<1x2xf32, #tpu.memory_space<vmem>>, vector<1x2xf32>
    %21 = vector.broadcast %20 : vector<1x2xf32> to vector<256x2xf32>
    %22 = arith.addf %19, %21 : vector<256x2xf32>
    %c0_17 = arith.constant 0 : index
    %c0_18 = arith.constant 0 : index
    %23 = vector.load %arg8[%c0_17, %c0_18] : memref<256x2xf32, #tpu.memory_space<vmem>>, vector<256x2xf32>
    tpu.vector_store %arg8[%c0_17, %c0_18], %22 {strides = array<i32>} : memref<256x2xf32, #tpu.memory_space<vmem>>, vector<256x2xf32>,
    return
  }
  func.func @transform_0(%arg0: i32) -> (i32, i32) {
    %c0_i32 = arith.constant 0 : i32
    %c0_i32_0 = arith.constant 0 : i32
    return %arg0, %c0_i32 : i32, i32
  }
  func.func @transform_1(%arg0: i32) -> (i32, i32) {
    %c0_i32 = arith.constant 0 : i32
    %c0_i32_0 = arith.constant 0 : i32
    %c0_i32_1 = arith.constant 0 : i32
    return %c0_i32, %c0_i32_0 : i32, i32
  }
  func.func @transform_2(%arg0: i32) -> (i32, i32) {
    %c0_i32 = arith.constant 0 : i32
    %c0_i32_0 = arith.constant 0 : i32
    %c0_i32_1 = arith.constant 0 : i32
    return %c0_i32, %c0_i32_0 : i32, i32
  }
  func.func @transform_3(%arg0: i32) -> (i32, i32) {
    %c0_i32 = arith.constant 0 : i32
    %c0_i32_0 = arith.constant 0 : i32
    %c0_i32_1 = arith.constant 0 : i32
    return %c0_i32, %c0_i32_0 : i32, i32
  }
  func.func @transform_4(%arg0: i32) -> (i32, i32) {
    %c0_i32 = arith.constant 0 : i32
    %c0_i32_0 = arith.constant 0 : i32
    %c0_i32_1 = arith.constant 0 : i32
    return %c0_i32, %c0_i32_0 : i32, i32
  }
  func.func @transform_5(%arg0: i32) -> (i32, i32) {
    %c0_i32 = arith.constant 0 : i32
    %c0_i32_0 = arith.constant 0 : i32
    %c0_i32_1 = arith.constant 0 : i32
    return %c0_i32, %c0_i32_0 : i32, i32
  }
  func.func @transform_6(%arg0: i32) -> (i32, i32) {
    %c0_i32 = arith.constant 0 : i32
    %c0_i32_0 = arith.constant 0 : i32
    %c0_i32_1 = arith.constant 0 : i32
    return %c0_i32, %c0_i32_0 : i32, i32
  }
  func.func @transform_7(%arg0: i32) -> (i32, i32) {
    %c0_i32 = arith.constant 0 : i32
    %c0_i32_0 = arith.constant 0 : i32
    return %arg0, %c0_i32 : i32, i32
  }
}

</mosaic_0001>

<bundles_post_ra>
// kernel: simple_nn_classifier_forward.1
= control target key start
LH: loop header
LB: loop body
LE: loop exit
PB: predicated region body
PF: predicated region fallthrough
CT: control target
= control target key end

     0   :  { %s1550_s24 = smov 0   ;;  %s1865_s0 = inlined_call_operand.vmem [shape: f32[512,32], index: 0, kind: input, shape index: {}]   ;;  %s1866_s1 = inlined_call_operand.vmem [shape: bf16[32,128], index: 1, kind: input, shape index: {}]   ;;  %s1867_s2 = inlined_call_operand.vmem [shape: f32[1,128], index: 2, kind: input, shape index: {}]   ;;  %s1868_s3 = inlined_call_operand.vmem [shape: bf16[128,64], index: 3, kind: input, shape index: {}]   ;;  %s1869_s4 = inlined_call_operand.vmem [shape: f32[1,64], index: 4, kind: input, shape index: {}]   ;;  %s1870_s5 = inlined_call_operand.vmem [shape: bf16[64,2], index: 5, kind: input, shape index: {}]   ;;  %s1871_s6 = inlined_call_operand.vmem [shape: f32[1,2], index: 6, kind: input, shape index: {}]   ;;  %s1872_s7 = inlined_call_operand.vmem [shape: f32[512,2], index: 7, kind: output, shape index: {}]  }
   0x1 LB: > { %s1230_s25 = sadd.s32 4294967295, %s1508_s24   ;;  %p1234_p0 = scmp.ge.s32.totalorder %s1508_s24, 1  ;;  %s1508_s24 = sphi %s1550_s24, %s17_s24  }
   0x2   : > { %p238_p1 = scmp.lt.s32.totalorder %s1508_s24, 3 }
   0x4   : > { %p239_p2 = pnand %p1234_p0, %p238_p1 }
   0x5   : > { %v1488_v0 = vld [vmem:[%s1866_s1] sm:$0xff] (!%p239_p2)   ;;  %s1235_s28 = sshll.u32 (!%p239_p2), %s1230_s25, 5  ;;  %v1489_v1 = vld [vmem:[%s1866_s1 + $0x8] sm:$0xff] (!%p239_p2)   ;;  %vm354_vm0 = vcmask (!%p239_p2), 261120   ;;  %v1492_v29 = vld [vmem:[%s1868_s3 + $0x10] sm:$0xff] (!%p239_p2)   ;;  %vm931_vm1 = vcmask (!%p239_p2), 523264  }
   0x6   : > { %242 = sbr.rel (%p239_p2) target bundleno = 738 (0x2e2), region = 48  ;;  %p271_p3 = scmp.lt.s32.totalorder (!%p239_p2), %s1235_s28, 63  ;;  %1352 = vmatprep.subr.bf16.mxu0 (!%p239_p2), %v1488_v0  ;;  %1476 = vmatprep.subr.bf16.mxu1 (!%p239_p2), %v1488_v0  ;;  %v1490_v2 = vld [vmem:[%s1868_s3] sm:$0xff] (!%p239_p2)   ;;  %v1491_v24 = vld [vmem:[%s1868_s3 + $0x8] sm:$0xff] (!%p239_p2)   ;;  %v1493_v39 = vld [vmem:[%s1868_s3 + $0x18] sm:$0xff] (!%p239_p2)   ;;  %vm1141_vm2 = vcmask (!%p239_p2), 15360  }
   0x7   : > { %1353 = vmatpush3.bf16.msra.mxu0 (!%p239_p2), %v1488_v0  ;;  %1478 = vmatpush3.bf16.msra.mxu1 (!%p239_p2), %v1488_v0  ;;  %v1494_v46 = vld [vmem:[%s1868_s3 + $0x20] sm:$0xff] (!%p239_p2)   ;;  %v1495_v51 = vld [vmem:[%s1868_s3 + $0x28] sm:$0xff] (!%p239_p2)   ;;  %v1496_v56 = vld [vmem:[%s1868_s3 + $0x30] sm:$0xff] (!%p239_p2)  }
   0x8   : > { %1354 = vmatprep.subr.bf16.mxu0 (!%p239_p2), %v1489_v1  ;;  %1477 = vmatprep.subr.bf16.mxu1 (!%p239_p2), %v1489_v1  ;;  %v1497_v57 = vld [vmem:[%s1868_s3 + $0x38] sm:$0xff] (!%p239_p2)   ;;  %v1498_v58 = vld [vmem:[%s1870_s5] sm:$0xff] (!%p239_p2)   ;;  %v1499_v59 = vld [vmem:[%s1870_s5 + $0x8] sm:$0xff] (!%p239_p2)  }
   0x9   : > { %v1500_v60 = vld [vmem:[%s1870_s5 + $0x10] sm:$0xff] (!%p239_p2)   ;;  %v1658_v61 = vld [vmem:[%s1867_s2] ss:$0 sm:$0xff] (!%p239_p2) }
   0xb   : > { %1355 = vmatpush3.bf16.msra.mxu0 (!%p239_p2), %v1489_v1  ;;  %1479 = vmatpush3.bf16.msra.mxu1 (!%p239_p2), %v1489_v1 }
   0xc   : > { %1388 = vmatprep.subr.bf16.mxu1 (!%p239_p2), %v1490_v2  ;;  %1436 = vmatprep.subr.bf16.mxu0 (!%p239_p2), %v1498_v58 }
   0xd   : > { %s1874_s28 = smov (!%p271_p3, %s1235_s28), 63 }
   0xe   : > { %s1236_s10 = sshll.u32 %s1874_s28, 3 }
   0xf   : > { %s1575_s13 = scalar_lea.vmem %s1865_s0, %s1236_s10  ;;  %s1764_s25 = scalar_lea.vmem %s1872_s7, %s1236_s10 }
  0x10   : > { %v283_v3 = vld [vmem:[%s1575_s13] sm:$0xff]  ;;  %v284_v4 = vld [vmem:[%s1575_s13 + $0x8] sm:$0xff]  ;;  %v285_v5 = vld [vmem:[%s1575_s13 + $0x10] sm:$0xff] }
  0x11   : > { %v315_v6 = vpack.c.bf16 %v284_v4, %v283_v3  ;;  %v286_v7 = vld [vmem:[%s1575_s13 + $0x18] sm:$0xff]  ;;  %v287_v8 = vld [vmem:[%s1575_s13 + $0x20] sm:$0xff]  ;;  %v288_v9 = vld [vmem:[%s1575_s13 + $0x28] sm:$0xff] }
  0x12   : > { %v316_v10 = vpack.c.bf16 %v286_v7, %v285_v5  ;;  %v317_v11 = vpack.c.bf16 %v288_v9, %v287_v8  ;;  %v289_v12 = vld [vmem:[%s1575_s13 + $0x30] sm:$0xff]  ;;  %v290_v13 = vld [vmem:[%s1575_s13 + $0x38] sm:$0xff]  ;;  %v291_v14 = vld [vmem:[%s1575_s13 + $0x40] sm:$0xff] }
  0x13   : > { %1356 = vmatprep.mubr.msk.bf16.mxu0 %vm354_vm0, %v315_v6  ;;  %v292_v15 = vld [vmem:[%s1575_s13 + $0x48] sm:$0xff]  ;;  %v299_v16 = vld [vmem:[%s1575_s13 + $0x80] sm:$0xff]  ;;  %v301_v19 = vld [vmem:[%s1575_s13 + $0x90] sm:$0xff]  ;;  %v318_v25 = vpack.c.bf16 %v290_v13, %v289_v12 }
  0x14   : > { %1357 = vmatmul.mubr.msk.bf16.vlgmr.msra.gmra.mrb[0].mxu0 %vm354_vm0, %v316_v10  ;;  %v300_v17 = vld [vmem:[%s1575_s13 + $0x88] sm:$0xff]  ;;  %v302_v20 = vld [vmem:[%s1575_s13 + $0x98] sm:$0xff]  ;;  %v303_v21 = vld [vmem:[%s1575_s13 + $0xa0] sm:$0xff]  ;;  %v319_v27 = vpack.c.bf16 %v292_v15, %v291_v14 }
  0x15   : > { %1360 = vmatprep.mubr.msk.bf16.mxu0 %vm354_vm0, %v317_v11  ;;  %v323_v18 = vpack.c.bf16 %v300_v17, %v299_v16  ;;  %v324_v22 = vpack.c.bf16 %v302_v20, %v301_v19  ;;  %v304_v23 = vld [vmem:[%s1575_s13 + $0xa8] sm:$0xff]  ;;  %v305_v28 = vld [vmem:[%s1575_s13 + $0xb0] sm:$0xff]  ;;  %v306_v30 = vld [vmem:[%s1575_s13 + $0xb8] sm:$0xff]  ;;  %1437 = vmatpush3.bf16.msra.mxu0 %v1498_v58 }
  0x16   : > { %v325_v26 = vpack.c.bf16 %v304_v23, %v303_v21  ;;  %v307_v31 = vld [vmem:[%s1575_s13 + $0xc0] sm:$0xff]  ;;  %v293_v32 = vld [vmem:[%s1575_s13 + $0x50] sm:$0xff]  ;;  %v294_v33 = vld [vmem:[%s1575_s13 + $0x58] sm:$0xff]  ;;  %v326_v37 = vpack.c.bf16 %v306_v30, %v305_v28  ;;  %1438 = vmatprep.subr.bf16.mxu0 %v1499_v59 }
  0x17   : > { %1372 = vmatprep.mubr.msk.bf16.mxu1 %vm354_vm0, %v323_v18  ;;  %v308_v34 = vld [vmem:[%s1575_s13 + $0xc8] sm:$0xff]  ;;  %v295_v35 = vld [vmem:[%s1575_s13 + $0x60] sm:$0xff]  ;;  %v320_v40 = vpack.c.bf16 %v294_v33, %v293_v32  ;;  %v309_v42 = vld [vmem:[%s1575_s13 + $0xd0] sm:$0xff] }
  0x18   : > { %1373 = vmatmul.mubr.msk.bf16.vlgmr.msra.gmra.mrb[0].mxu1 %vm354_vm0, %v324_v22  ;;  %v296_v36 = vld [vmem:[%s1575_s13 + $0x68] sm:$0xff]  ;;  %v327_v38 = vpack.c.bf16 %v308_v34, %v307_v31  ;;  %v310_v43 = vld [vmem:[%s1575_s13 + $0xd8] sm:$0xff]  ;;  %v311_v44 = vld [vmem:[%s1575_s13 + $0xe0] sm:$0xff] }
  0x19   : > { %1376 = vmatprep.mubr.msk.bf16.mxu1 %vm354_vm0, %v325_v26  ;;  %1389 = vmatpush3.bf16.msra.mxu1 %v1490_v2  ;;  %v321_v41 = vpack.c.bf16 %v296_v36, %v295_v35  ;;  %v312_v45 = vld [vmem:[%s1575_s13 + $0xe8] sm:$0xff]  ;;  %v297_v47 = vld [vmem:[%s1575_s13 + $0x70] sm:$0xff]  ;;  %v298_v48 = vld [vmem:[%s1575_s13 + $0x78] sm:$0xff]  ;;  %v328_v49 = vpack.c.bf16 %v310_v43, %v309_v42 }
  0x1a   : > { %1390 = vmatprep.subr.bf16.mxu1 %v1491_v24  ;;  %v329_v50 = vpack.c.bf16 %v312_v45, %v311_v44  ;;  %v322_v52 = vpack.c.bf16 %v298_v48, %v297_v47  ;;  %v313_v53 = vld [vmem:[%s1575_s13 + $0xf0] sm:$0xff]  ;;  %v314_v54 = vld [vmem:[%s1575_s13 + $0xf8] sm:$0xff]  ;;  %1439 = vmatpush3.bf16.msra.mxu0 %v1499_v59 }
  0x1b   : > { %v330_v55 = vpack.c.bf16 %v314_v54, %v313_v53  ;;  %1440 = vmatprep.subr.bf16.mxu0 %v1500_v60 }
  0x1c   : > { %1361 = vmatmul.mubr.msk.bf16.gmra.mrb[4].mxu0 %vm354_vm0, %v318_v25 }
  0x1d   : > { %1364 = vmatprep.mubr.msk.bf16.mxu0 %vm354_vm0, %v319_v27  ;;  %1391 = vmatpush3.bf16.msra.mxu1 %v1491_v24 }
  0x1e   : > { %1392 = vmatprep.subr.bf16.mxu1 %v1492_v29  ;;  %1441 = vmatpush3.bf16.msra.mxu0 %v1500_v60 }
  0x20   : > { %1377 = vmatmul.mubr.msk.bf16.gmra.mrb[4].mxu1 %vm354_vm0, %v326_v37 }
  0x21   : > { %1380 = vmatprep.mubr.msk.bf16.mxu1 %vm354_vm0, %v327_v38  ;;  %1393 = vmatpush3.bf16.msra.mxu1 %v1492_v29 }
  0x22   : > { %1394 = vmatprep.subr.bf16.mxu1 %v1493_v39 }
  0x24   : > { %1365 = vmatmul.mubr.msk.bf16.gmra.mrb[8].mxu0 %vm354_vm0, %v320_v40 }
  0x25   : > { %1368 = vmatprep.mubr.msk.bf16.mxu0 %vm354_vm0, %v321_v41  ;;  %1395 = vmatpush3.bf16.msra.mxu1 %v1493_v39 }
  0x26   : > { %1396 = vmatprep.subr.bf16.mxu1 %v1494_v46 }
  0x28   : > { %1381 = vmatmul.mubr.msk.bf16.gmra.mrb[8].mxu1 %vm354_vm0, %v328_v49 }
  0x29   : > { %1384 = vmatprep.mubr.msk.bf16.mxu1 %vm354_vm0, %v329_v50  ;;  %1397 = vmatpush3.bf16.msra.mxu1 %v1494_v46 }
  0x2a   : > { %1398 = vmatprep.subr.bf16.mxu1 %v1495_v51 }
  0x2c   : > { %1369 = vmatmul.mubr.msk.bf16.gmra.mrb[12].mxu0 %vm354_vm0, %v322_v52 }
  0x2d   : > { %1399 = vmatpush3.bf16.msra.mxu1 %v1495_v51 }
  0x2e   : > { %1400 = vmatprep.subr.bf16.mxu1 %v1496_v56 }
  0x30   : > { %1385 = vmatmul.mubr.msk.bf16.gmra.mrb[12].mxu1 %vm354_vm0, %v330_v55 }
  0x31   : > { %1401 = vmatpush3.bf16.msra.mxu1 %v1496_v56 }
  0x32   : > { %1402 = vmatprep.subr.bf16.mxu1 %v1497_v57 }
  0x35   : > { %1403 = vmatpush3.bf16.msra.mxu1 %v1497_v57 }
  0xe7   : > { %v1358_v62 = vpop.f32.mrb[0].mxu0 }
  0xe8   : > { %v446_v63 = vadd.f32 %v1358_v62, %v1658_v61  ;;  %v437_v0 = vpop.f32.mrb[1].mxu0 }
  0xe9   : > { %v438_v1 = vadd.f32 %v1658_v61, %v437_v0  ;;  %v1359_v2 = vpop.f32.mrb[2].mxu0 }
  0xea   : > { %v449_v3 = vadd.f32 %v1359_v2, %v1658_v61  ;;  %v440_v4 = vpop.f32.mrb[3].mxu0  ;;  %v566_v6 = vmax.f32 %v446_v63, 0.0 }
  0xeb   : > { %v441_v5 = vadd.f32 %v1658_v61, %v440_v4  ;;  %v1374_v8 = vpop.f32.mrb[0].mxu1  ;;  %v564_v9 = vmax.f32 %v438_v1, 0.0 }
  0xec   : > { %v567_v7 = vmax.f32 %v449_v3, 0.0  ;;  %v510_v11 = vadd.f32 %v1374_v8, %v1658_v61  ;;  %v501_v12 = vpop.f32.mrb[1].mxu1 }
  0xed   : > { %v565_v10 = vmax.f32 %v441_v5, 0.0  ;;  %v502_v14 = vadd.f32 %v1658_v61, %v501_v12  ;;  %v1375_v15 = vpop.f32.mrb[2].mxu1 }
  0xee   : > { %v597_v13 = vpack.c.bf16 %v567_v7, %v566_v6  ;;  %v582_v18 = vmax.f32 %v510_v11, 0.0  ;;  %v513_v19 = vadd.f32 %v1375_v15, %v1658_v61  ;;  %v504_v20 = vpop.f32.mrb[3].mxu1 }
  0xef   : > { %v596_v16 = vpack.c.bf16 %v565_v10, %v564_v9  ;;  %v1362_v17 = vpop.f32.mrb[4].mxu0  ;;  %v580_v23 = vmax.f32 %v502_v14, 0.0  ;;  %v505_v24 = vadd.f32 %v1658_v61, %v504_v20 }
  0xf0   : > { %v462_v21 = vadd.f32 %v1362_v17, %v1658_v61  ;;  %v453_v22 = vpop.f32.mrb[5].mxu0  ;;  %v583_v27 = vmax.f32 %v513_v19, 0.0 }
  0xf1   : > { %v454_v25 = vadd.f32 %v1658_v61, %v453_v22  ;;  %v1363_v26 = vpop.f32.mrb[6].mxu0  ;;  %1404 = vmatprep.mubr.bf16.mxu1 %v596_v16  ;;  %v581_v30 = vmax.f32 %v505_v24, 0.0 }
  0xf2   : > { %v465_v28 = vadd.f32 %v1363_v26, %v1658_v61  ;;  %v456_v29 = vpop.f32.mrb[7].mxu0  ;;  %1405 = vmatmul.mubr.bf16.vlgmr.msra.gmra.mrb[16].mxu1 %v597_v13  ;;  %v1672_v32 = vpack.c.bf16 %v583_v27, %v582_v18  ;;  %v570_v33 = vmax.f32 %v462_v21, 0.0 }
  0xf3   : > { %v457_v31 = vadd.f32 %v1658_v61, %v456_v29  ;;  %v1674_v35 = vpack.c.bf16 %v581_v30, %v580_v23  ;;  %v1378_v36 = vpop.f32.mrb[4].mxu1  ;;  %v568_v37 = vmax.f32 %v454_v25, 0.0 }
  0xf4   : > { %v571_v34 = vmax.f32 %v465_v28, 0.0  ;;  %v526_v39 = vadd.f32 %v1378_v36, %v1658_v61  ;;  %v517_v40 = vpop.f32.mrb[5].mxu1 }
  0xf5   : > { %v569_v38 = vmax.f32 %v457_v31, 0.0  ;;  %v518_v42 = vadd.f32 %v1658_v61, %v517_v40  ;;  %v1379_v43 = vpop.f32.mrb[6].mxu1 }
  0xf6   : > { %v599_v41 = vpack.c.bf16 %v571_v34, %v570_v33  ;;  %v586_v46 = vmax.f32 %v526_v39, 0.0  ;;  %v529_v47 = vadd.f32 %v1379_v43, %v1658_v61  ;;  %v520_v48 = vpop.f32.mrb[7].mxu1 }
  0xf7   : > { %v598_v44 = vpack.c.bf16 %v569_v38, %v568_v37  ;;  %v1366_v45 = vpop.f32.mrb[8].mxu0  ;;  %v584_v51 = vmax.f32 %v518_v42, 0.0  ;;  %v521_v52 = vadd.f32 %v1658_v61, %v520_v48 }
  0xf8   : > { %v478_v49 = vadd.f32 %v1366_v45, %v1658_v61  ;;  %v469_v50 = vpop.f32.mrb[9].mxu0  ;;  %v587_v55 = vmax.f32 %v529_v47, 0.0 }
  0xf9   : > { %v470_v53 = vadd.f32 %v1658_v61, %v469_v50  ;;  %v1367_v54 = vpop.f32.mrb[10].mxu0  ;;  %1408 = vmatprep.mubr.bf16.mxu1 %v598_v44  ;;  %v585_v58 = vmax.f32 %v521_v52, 0.0 }
  0xfa   : > { %v481_v56 = vadd.f32 %v1367_v54, %v1658_v61  ;;  %v472_v57 = vpop.f32.mrb[11].mxu0  ;;  %1409 = vmatmul.mubr.bf16.gmra.mrb[20].mxu1 %v599_v41  ;;  %v607_v60 = vpack.c.bf16 %v587_v55, %v586_v46  ;;  %v574_v62 = vmax.f32 %v478_v49, 0.0 }
  0xfb   : > { %v473_v59 = vadd.f32 %v1658_v61, %v472_v57  ;;  %v606_v0 = vpack.c.bf16 %v585_v58, %v584_v51  ;;  %v1382_v1 = vpop.f32.mrb[8].mxu1  ;;  %v572_v2 = vmax.f32 %v470_v53, 0.0 }
  0xfc   : > { %v575_v63 = vmax.f32 %v481_v56, 0.0  ;;  %v542_v4 = vadd.f32 %v1382_v1, %v1658_v61  ;;  %v533_v5 = vpop.f32.mrb[9].mxu1 }
  0xfd   : > { %v573_v3 = vmax.f32 %v473_v59, 0.0  ;;  %v534_v7 = vadd.f32 %v1658_v61, %v533_v5  ;;  %v1383_v8 = vpop.f32.mrb[10].mxu1 }
  0xfe   : > { %v601_v6 = vpack.c.bf16 %v575_v63, %v574_v62  ;;  %v590_v11 = vmax.f32 %v542_v4, 0.0  ;;  %v545_v12 = vadd.f32 %v1383_v8, %v1658_v61  ;;  %v536_v13 = vpop.f32.mrb[11].mxu1 }
  0xff   : > { %v600_v9 = vpack.c.bf16 %v573_v3, %v572_v2  ;;  %v1370_v10 = vpop.f32.mrb[12].mxu0  ;;  %v588_v16 = vmax.f32 %v534_v7, 0.0  ;;  %v537_v17 = vadd.f32 %v1658_v61, %v536_v13 }
 0x100   : > { %v494_v14 = vadd.f32 %v1370_v10, %v1658_v61  ;;  %v485_v15 = vpop.f32.mrb[13].mxu0  ;;  %v591_v20 = vmax.f32 %v545_v12, 0.0 }
 0x101   : > { %v486_v18 = vadd.f32 %v1658_v61, %v485_v15  ;;  %v1371_v19 = vpop.f32.mrb[14].mxu0  ;;  %1412 = vmatprep.mubr.bf16.mxu1 %v600_v9  ;;  %v589_v23 = vmax.f32 %v537_v17, 0.0 }
 0x102   : > { %v497_v21 = vadd.f32 %v1371_v19, %v1658_v61  ;;  %v488_v22 = vpop.f32.mrb[15].mxu0  ;;  %1413 = vmatmul.mubr.bf16.gmra.mrb[24].mxu1 %v601_v6  ;;  %v609_v25 = vpack.c.bf16 %v591_v20, %v590_v11  ;;  %v578_v26 = vmax.f32 %v494_v14, 0.0 }
 0x103   : > { %v489_v24 = vadd.f32 %v1658_v61, %v488_v22  ;;  %v608_v28 = vpack.c.bf16 %v589_v23, %v588_v16  ;;  %v1386_v29 = vpop.f32.mrb[12].mxu1  ;;  %v576_v30 = vmax.f32 %v486_v18, 0.0 }
 0x104   : > { %v579_v27 = vmax.f32 %v497_v21, 0.0  ;;  %v558_v33 = vadd.f32 %v1386_v29, %v1658_v61  ;;  %v549_v34 = vpop.f32.mrb[13].mxu1 }
 0x105   : > { %v577_v31 = vmax.f32 %v489_v24, 0.0  ;;  %v550_v37 = vadd.f32 %v1658_v61, %v549_v34  ;;  %v1387_v38 = vpop.f32.mrb[14].mxu1 }
 0x106   : > { %v603_v36 = vpack.c.bf16 %v579_v27, %v578_v26  ;;  %v594_v40 = vmax.f32 %v558_v33, 0.0  ;;  %v561_v41 = vadd.f32 %v1387_v38, %v1658_v61  ;;  %v552_v42 = vpop.f32.mrb[15].mxu1 }
 0x107   : > { %v602_v39 = vpack.c.bf16 %v577_v31, %v576_v30  ;;  %v592_v43 = vmax.f32 %v550_v37, 0.0  ;;  %v553_v44 = vadd.f32 %v1658_v61, %v552_v42  ;;  %v1501_v61 = vld [vmem:[%s1870_s5 + $0x18] sm:$0xff]  }
 0x108   : > { %v595_v45 = vmax.f32 %v561_v41, 0.0  ;;  %1442 = vmatprep.subr.bf16.mxu0 %v1501_v61 }
 0x109   : > { %1416 = vmatprep.mubr.bf16.mxu1 %v602_v39  ;;  %v593_v46 = vmax.f32 %v553_v44, 0.0  ;;  %1443 = vmatpush3.bf16.msra.mxu0 %v1501_v61 }
 0x10a   : > { %1417 = vmatmul.mubr.bf16.gmra.mrb[28].mxu1 %v603_v36  ;;  %v611_v47 = vpack.c.bf16 %v595_v45, %v594_v40 }
 0x10b   : > { %1420 = vmatprep.mubr.bf16.mxu1 %v1674_v35  ;;  %v610_v48 = vpack.c.bf16 %v593_v46, %v592_v43  ;;  %v1704_v35 = vld [vmem:[%s1869_s4] ss:$0 sm:$0xff] }
 0x112   : > { %1421 = vmatmul.mubr.bf16.gmra.mrb[32].mxu1 %v1672_v32 }
 0x113   : > { %1424 = vmatprep.mubr.bf16.mxu1 %v606_v0 }
 0x11a   : > { %1425 = vmatmul.mubr.bf16.gmra.mrb[36].mxu1 %v607_v60 }
 0x11b   : > { %1428 = vmatprep.mubr.bf16.mxu1 %v608_v28 }
 0x122   : > { %1429 = vmatmul.mubr.bf16.gmra.mrb[40].mxu1 %v609_v25 }
 0x123   : > { %1432 = vmatprep.mubr.bf16.mxu1 %v610_v48 }
 0x12a   : > { %1433 = vmatmul.mubr.bf16.gmra.mrb[44].mxu1 %v611_v47 }
 0x1c5   : > { %v1406_v49 = vpop.f32.mrb[16].mxu1 }
 0x1c6   : > { %v726_v32 = vadd.f32 %v1406_v49, %v1704_v35  ;;  %v717_v50 = vpop.f32.mrb[17].mxu1 }
 0x1c7   : > { %v718_v51 = vadd.f32 %v1704_v35, %v717_v50  ;;  %v1407_v52 = vpop.f32.mrb[18].mxu1 }
 0x1c8   : > { %v729_v53 = vadd.f32 %v1407_v52, %v1704_v35  ;;  %v720_v54 = vpop.f32.mrb[19].mxu1  ;;  %v846_v56 = vmax.f32 %v726_v32, 0.0 }
 0x1c9   : > { %v721_v55 = vadd.f32 %v1704_v35, %v720_v54  ;;  %v844_v58 = vmax.f32 %v718_v51, 0.0 }
 0x1ca   : > { %v847_v57 = vmax.f32 %v729_v53, 0.0 }
 0x1cb   : > { %v845_v59 = vmax.f32 %v721_v55, 0.0 }
 0x1cc   : > { %v877_v60 = vpack.c.bf16 %v847_v57, %v846_v56 }
 0x1cd   : > { %v876_v62 = vpack.c.bf16 %v845_v59, %v844_v58  ;;  %v1410_v63 = vpop.f32.mrb[20].mxu1 }
 0x1ce   : > { %v742_v0 = vadd.f32 %v1410_v63, %v1704_v35  ;;  %v733_v1 = vpop.f32.mrb[21].mxu1 }
 0x1cf   : > { %v734_v2 = vadd.f32 %v1704_v35, %v733_v1  ;;  %v1411_v3 = vpop.f32.mrb[22].mxu1  ;;  %1444 = vmatprep.mubr.msk.bf16.mxu0 %vm931_vm1, %v876_v62 }
 0x1d0   : > { %v745_v4 = vadd.f32 %v1411_v3, %v1704_v35  ;;  %v736_v5 = vpop.f32.mrb[23].mxu1  ;;  %1445 = vmatmul.mubr.msk.bf16.vlgmr.msra.gmra.mrb[16].mxu0 %vm931_vm1, %v877_v60  ;;  %v850_v7 = vmax.f32 %v742_v0, 0.0 }
 0x1d1   : > { %v737_v6 = vadd.f32 %v1704_v35, %v736_v5  ;;  %v848_v9 = vmax.f32 %v734_v2, 0.0 }
 0x1d2   : > { %v851_v8 = vmax.f32 %v745_v4, 0.0 }
 0x1d3   : > { %v849_v10 = vmax.f32 %v737_v6, 0.0 }
 0x1d4   : > { %v879_v11 = vpack.c.bf16 %v851_v8, %v850_v7 }
 0x1d5   : > { %v878_v12 = vpack.c.bf16 %v849_v10, %v848_v9  ;;  %v1414_v13 = vpop.f32.mrb[24].mxu1 }
 0x1d6   : > { %v758_v14 = vadd.f32 %v1414_v13, %v1704_v35  ;;  %v749_v15 = vpop.f32.mrb[25].mxu1 }
 0x1d7   : > { %v750_v16 = vadd.f32 %v1704_v35, %v749_v15  ;;  %v1415_v17 = vpop.f32.mrb[26].mxu1  ;;  %1448 = vmatprep.mubr.msk.bf16.mxu0 %vm931_vm1, %v878_v12 }
 0x1d8   : > { %v761_v18 = vadd.f32 %v1415_v17, %v1704_v35  ;;  %v752_v19 = vpop.f32.mrb[27].mxu1  ;;  %1449 = vmatmul.mubr.msk.bf16.gmra.mrb[20].mxu0 %vm931_vm1, %v879_v11  ;;  %v854_v21 = vmax.f32 %v758_v14, 0.0 }
 0x1d9   : > { %v753_v20 = vadd.f32 %v1704_v35, %v752_v19  ;;  %v852_v23 = vmax.f32 %v750_v16, 0.0 }
 0x1da   : > { %v855_v22 = vmax.f32 %v761_v18, 0.0 }
 0x1db   : > { %v853_v24 = vmax.f32 %v753_v20, 0.0 }
 0x1dc   : > { %v881_v25 = vpack.c.bf16 %v855_v22, %v854_v21 }
 0x1dd   : > { %v880_v26 = vpack.c.bf16 %v853_v24, %v852_v23  ;;  %v1418_v27 = vpop.f32.mrb[28].mxu1 }
 0x1de   : > { %v774_v28 = vadd.f32 %v1418_v27, %v1704_v35  ;;  %v765_v29 = vpop.f32.mrb[29].mxu1 }
 0x1df   : > { %v766_v30 = vadd.f32 %v1704_v35, %v765_v29  ;;  %v1419_v31 = vpop.f32.mrb[30].mxu1  ;;  %1452 = vmatprep.mubr.msk.bf16.mxu0 %vm931_vm1, %v880_v26 }
 0x1e0   : > { %v777_v33 = vadd.f32 %v1419_v31, %v1704_v35  ;;  %v768_v34 = vpop.f32.mrb[31].mxu1  ;;  %1453 = vmatmul.mubr.msk.bf16.gmra.mrb[24].mxu0 %vm931_vm1, %v881_v25  ;;  %v858_v37 = vmax.f32 %v774_v28, 0.0 }
 0x1e1   : > { %v769_v36 = vadd.f32 %v1704_v35, %v768_v34  ;;  %v856_v39 = vmax.f32 %v766_v30, 0.0 }
 0x1e2   : > { %v859_v38 = vmax.f32 %v777_v33, 0.0 }
 0x1e3   : > { %v857_v40 = vmax.f32 %v769_v36, 0.0  ;;  %v1757_v36 = vld [vmem:[%s1871_s6] ss:$0 sm:$0xff] }
 0x1e4   : > { %v883_v41 = vpack.c.bf16 %v859_v38, %v858_v37 }
 0x1e5   : > { %v882_v42 = vpack.c.bf16 %v857_v40, %v856_v39  ;;  %v1422_v43 = vpop.f32.mrb[32].mxu1 }
 0x1e6   : > { %v790_v44 = vadd.f32 %v1422_v43, %v1704_v35  ;;  %v781_v45 = vpop.f32.mrb[33].mxu1 }
 0x1e7   : > { %v782_v46 = vadd.f32 %v1704_v35, %v781_v45  ;;  %v1423_v47 = vpop.f32.mrb[34].mxu1  ;;  %1456 = vmatprep.mubr.msk.bf16.mxu0 %vm931_vm1, %v882_v42 }
 0x1e8   : > { %v793_v48 = vadd.f32 %v1423_v47, %v1704_v35  ;;  %v784_v61 = vpop.f32.mrb[35].mxu1  ;;  %1457 = vmatmul.mubr.msk.bf16.gmra.mrb[28].mxu0 %vm931_vm1, %v883_v41  ;;  %v862_v32 = vmax.f32 %v790_v44, 0.0 }
 0x1e9   : > { %v785_v49 = vadd.f32 %v1704_v35, %v784_v61  ;;  %v860_v51 = vmax.f32 %v782_v46, 0.0 }
 0x1ea   : > { %v863_v50 = vmax.f32 %v793_v48, 0.0 }
 0x1eb   : > { %v861_v52 = vmax.f32 %v785_v49, 0.0 }
 0x1ec   : > { %v885_v53 = vpack.c.bf16 %v863_v50, %v862_v32 }
 0x1ed   : > { %v884_v54 = vpack.c.bf16 %v861_v52, %v860_v51  ;;  %v1426_v55 = vpop.f32.mrb[36].mxu1 }
 0x1ee   : > { %v806_v56 = vadd.f32 %v1426_v55, %v1704_v35  ;;  %v797_v57 = vpop.f32.mrb[37].mxu1 }
 0x1ef   : > { %v798_v58 = vadd.f32 %v1704_v35, %v797_v57  ;;  %v1427_v59 = vpop.f32.mrb[38].mxu1  ;;  %1460 = vmatprep.mubr.msk.bf16.mxu0 %vm931_vm1, %v884_v54 }
 0x1f0   : > { %v809_v60 = vadd.f32 %v1427_v59, %v1704_v35  ;;  %v800_v62 = vpop.f32.mrb[39].mxu1  ;;  %1461 = vmatmul.mubr.msk.bf16.gmra.mrb[32].mxu0 %vm931_vm1, %v885_v53  ;;  %v866_v0 = vmax.f32 %v806_v56, 0.0 }
 0x1f1   : > { %v801_v63 = vadd.f32 %v1704_v35, %v800_v62  ;;  %v864_v2 = vmax.f32 %v798_v58, 0.0 }
 0x1f2   : > { %v867_v1 = vmax.f32 %v809_v60, 0.0 }
 0x1f3   : > { %v865_v3 = vmax.f32 %v801_v63, 0.0 }
 0x1f4   : > { %v887_v4 = vpack.c.bf16 %v867_v1, %v866_v0 }
 0x1f5   : > { %v886_v5 = vpack.c.bf16 %v865_v3, %v864_v2  ;;  %v1430_v6 = vpop.f32.mrb[40].mxu1 }
 0x1f6   : > { %v822_v7 = vadd.f32 %v1430_v6, %v1704_v35  ;;  %v813_v8 = vpop.f32.mrb[41].mxu1 }
 0x1f7   : > { %v814_v9 = vadd.f32 %v1704_v35, %v813_v8  ;;  %v1431_v10 = vpop.f32.mrb[42].mxu1  ;;  %1464 = vmatprep.mubr.msk.bf16.mxu0 %vm931_vm1, %v886_v5 }
 0x1f8   : > { %v825_v11 = vadd.f32 %v1431_v10, %v1704_v35  ;;  %v816_v12 = vpop.f32.mrb[43].mxu1  ;;  %1465 = vmatmul.mubr.msk.bf16.gmra.mrb[36].mxu0 %vm931_vm1, %v887_v4  ;;  %v870_v14 = vmax.f32 %v822_v7, 0.0 }
 0x1f9   : > { %v817_v13 = vadd.f32 %v1704_v35, %v816_v12  ;;  %v868_v16 = vmax.f32 %v814_v9, 0.0 }
 0x1fa   : > { %v871_v15 = vmax.f32 %v825_v11, 0.0 }
 0x1fb   : > { %v869_v17 = vmax.f32 %v817_v13, 0.0 }
 0x1fc   : > { %v889_v18 = vpack.c.bf16 %v871_v15, %v870_v14 }
 0x1fd   : > { %v888_v19 = vpack.c.bf16 %v869_v17, %v868_v16  ;;  %v1434_v20 = vpop.f32.mrb[44].mxu1 }
 0x1fe   : > { %v838_v21 = vadd.f32 %v1434_v20, %v1704_v35  ;;  %v829_v22 = vpop.f32.mrb[45].mxu1 }
 0x1ff   : > { %v830_v23 = vadd.f32 %v1704_v35, %v829_v22  ;;  %v1435_v24 = vpop.f32.mrb[46].mxu1  ;;  %1468 = vmatprep.mubr.msk.bf16.mxu0 %vm931_vm1, %v888_v19 }
 0x200   : > { %v841_v25 = vadd.f32 %v1435_v24, %v1704_v35  ;;  %v832_v26 = vpop.f32.mrb[47].mxu1  ;;  %1469 = vmatmul.mubr.msk.bf16.gmra.mrb[40].mxu0 %vm931_vm1, %v889_v18  ;;  %v874_v28 = vmax.f32 %v838_v21, 0.0 }
 0x201   : > { %v833_v27 = vadd.f32 %v1704_v35, %v832_v26  ;;  %v872_v30 = vmax.f32 %v830_v23, 0.0 }
 0x202   : > { %v875_v29 = vmax.f32 %v841_v25, 0.0 }
 0x203   : > { %v873_v31 = vmax.f32 %v833_v27, 0.0 }
 0x204   : > { %v891_v33 = vpack.c.bf16 %v875_v29, %v874_v28 }
 0x205   : > { %v890_v34 = vpack.c.bf16 %v873_v31, %v872_v30 }
 0x207   : > { %1472 = vmatprep.mubr.msk.bf16.mxu0 %vm931_vm1, %v890_v34 }
 0x208   : > { %1473 = vmatmul.mubr.msk.bf16.gmra.mrb[44].mxu0 %vm931_vm1, %v891_v33 }
 0x2a3   : > { %v1446_v35 = vpop.f32.mrb[16].mxu0 }
 0x2a4   : > { %v1023_v37 = vadd.f32 %v1446_v35, %v1757_v36  ;;  %v1014_v38 = vpop.f32.mrb[17].mxu0 }
 0x2a5   : > { %v1015_v39 = vadd.f32 %v1757_v36, %v1014_v38  ;;  %v1447_v40 = vpop.f32.mrb[18].mxu0 }
 0x2a6   : > { %1144 = vst.msk [vmem:[%s1764_s25 + $0x10] sm:$0xff] %vm1141_vm2, %v1023_v37  ;;  %v1026_v41 = vadd.f32 %v1447_v40, %v1757_v36  ;;  %v1017_v42 = vpop.f32.mrb[19].mxu0 }
 0x2a7   : > { %1142 = vst.msk [vmem:[%s1764_s25] sm:$0xff] %vm1141_vm2, %v1015_v39  ;;  %v1018_v43 = vadd.f32 %v1757_v36, %v1017_v42 }
 0x2a8   : > { %1145 = vst.msk [vmem:[%s1764_s25 + $0x18] sm:$0xff] %vm1141_vm2, %v1026_v41 }
 0x2a9   : > { %1143 = vst.msk [vmem:[%s1764_s25 + $0x8] sm:$0xff] %vm1141_vm2, %v1018_v43 }
 0x2ab   : > { %v1450_v44 = vpop.f32.mrb[20].mxu0 }
 0x2ac   : > { %v1039_v45 = vadd.f32 %v1450_v44, %v1757_v36  ;;  %v1030_v46 = vpop.f32.mrb[21].mxu0 }
 0x2ad   : > { %v1031_v47 = vadd.f32 %v1757_v36, %v1030_v46  ;;  %v1451_v48 = vpop.f32.mrb[22].mxu0 }
 0x2ae   : > { %1148 = vst.msk [vmem:[%s1764_s25 + $0x30] sm:$0xff] %vm1141_vm2, %v1039_v45  ;;  %v1042_v61 = vadd.f32 %v1451_v48, %v1757_v36  ;;  %v1033_v49 = vpop.f32.mrb[23].mxu0 }
 0x2af   : > { %1146 = vst.msk [vmem:[%s1764_s25 + $0x20] sm:$0xff] %vm1141_vm2, %v1031_v47  ;;  %v1034_v32 = vadd.f32 %v1757_v36, %v1033_v49 }
 0x2b0   : > { %1149 = vst.msk [vmem:[%s1764_s25 + $0x38] sm:$0xff] %vm1141_vm2, %v1042_v61 }
 0x2b1   : > { %1147 = vst.msk [vmem:[%s1764_s25 + $0x28] sm:$0xff] %vm1141_vm2, %v1034_v32 }
 0x2b3   : > { %v1454_v50 = vpop.f32.mrb[24].mxu0 }
 0x2b4   : > { %v1055_v51 = vadd.f32 %v1454_v50, %v1757_v36  ;;  %v1046_v52 = vpop.f32.mrb[25].mxu0 }
 0x2b5   : > { %v1047_v53 = vadd.f32 %v1757_v36, %v1046_v52  ;;  %v1455_v54 = vpop.f32.mrb[26].mxu0 }
 0x2b6   : > { %1152 = vst.msk [vmem:[%s1764_s25 + $0x50] sm:$0xff] %vm1141_vm2, %v1055_v51  ;;  %v1058_v55 = vadd.f32 %v1455_v54, %v1757_v36  ;;  %v1049_v56 = vpop.f32.mrb[27].mxu0 }
 0x2b7   : > { %1150 = vst.msk [vmem:[%s1764_s25 + $0x40] sm:$0xff] %vm1141_vm2, %v1047_v53  ;;  %v1050_v57 = vadd.f32 %v1757_v36, %v1049_v56 }
 0x2b8   : > { %1153 = vst.msk [vmem:[%s1764_s25 + $0x58] sm:$0xff] %vm1141_vm2, %v1058_v55 }
 0x2b9   : > { %1151 = vst.msk [vmem:[%s1764_s25 + $0x48] sm:$0xff] %vm1141_vm2, %v1050_v57 }
 0x2bb   : > { %v1458_v58 = vpop.f32.mrb[28].mxu0 }
 0x2bc   : > { %v1071_v59 = vadd.f32 %v1458_v58, %v1757_v36  ;;  %v1062_v60 = vpop.f32.mrb[29].mxu0 }
 0x2bd   : > { %v1063_v62 = vadd.f32 %v1757_v36, %v1062_v60  ;;  %v1459_v63 = vpop.f32.mrb[30].mxu0 }
 0x2be   : > { %1156 = vst.msk [vmem:[%s1764_s25 + $0x70] sm:$0xff] %vm1141_vm2, %v1071_v59  ;;  %v1074_v0 = vadd.f32 %v1459_v63, %v1757_v36  ;;  %v1065_v1 = vpop.f32.mrb[31].mxu0 }
 0x2bf   : > { %1154 = vst.msk [vmem:[%s1764_s25 + $0x60] sm:$0xff] %vm1141_vm2, %v1063_v62  ;;  %v1066_v2 = vadd.f32 %v1757_v36, %v1065_v1 }
 0x2c0   : > { %1157 = vst.msk [vmem:[%s1764_s25 + $0x78] sm:$0xff] %vm1141_vm2, %v1074_v0 }
 0x2c1   : > { %1155 = vst.msk [vmem:[%s1764_s25 + $0x68] sm:$0xff] %vm1141_vm2, %v1066_v2 }
 0x2c3   : > { %v1462_v3 = vpop.f32.mrb[32].mxu0 }
 0x2c4   : > { %v1087_v4 = vadd.f32 %v1462_v3, %v1757_v36  ;;  %v1078_v5 = vpop.f32.mrb[33].mxu0 }
 0x2c5   : > { %v1079_v6 = vadd.f32 %v1757_v36, %v1078_v5  ;;  %v1463_v7 = vpop.f32.mrb[34].mxu0 }
 0x2c6   : > { %1160 = vst.msk [vmem:[%s1764_s25 + $0x90] sm:$0xff] %vm1141_vm2, %v1087_v4  ;;  %v1090_v8 = vadd.f32 %v1463_v7, %v1757_v36  ;;  %v1081_v9 = vpop.f32.mrb[35].mxu0 }
 0x2c7   : > { %1158 = vst.msk [vmem:[%s1764_s25 + $0x80] sm:$0xff] %vm1141_vm2, %v1079_v6  ;;  %v1082_v10 = vadd.f32 %v1757_v36, %v1081_v9 }
 0x2c8   : > { %1161 = vst.msk [vmem:[%s1764_s25 + $0x98] sm:$0xff] %vm1141_vm2, %v1090_v8 }
 0x2c9   : > { %1159 = vst.msk [vmem:[%s1764_s25 + $0x88] sm:$0xff] %vm1141_vm2, %v1082_v10 }
 0x2cb   : > { %v1466_v11 = vpop.f32.mrb[36].mxu0 }
 0x2cc   : > { %v1103_v12 = vadd.f32 %v1466_v11, %v1757_v36  ;;  %v1094_v13 = vpop.f32.mrb[37].mxu0 }
 0x2cd   : > { %v1095_v14 = vadd.f32 %v1757_v36, %v1094_v13  ;;  %v1467_v15 = vpop.f32.mrb[38].mxu0 }
 0x2ce   : > { %1164 = vst.msk [vmem:[%s1764_s25 + $0xb0] sm:$0xff] %vm1141_vm2, %v1103_v12  ;;  %v1106_v16 = vadd.f32 %v1467_v15, %v1757_v36  ;;  %v1097_v17 = vpop.f32.mrb[39].mxu0 }
 0x2cf   : > { %1162 = vst.msk [vmem:[%s1764_s25 + $0xa0] sm:$0xff] %vm1141_vm2, %v1095_v14  ;;  %v1098_v18 = vadd.f32 %v1757_v36, %v1097_v17 }
 0x2d0   : > { %1165 = vst.msk [vmem:[%s1764_s25 + $0xb8] sm:$0xff] %vm1141_vm2, %v1106_v16 }
 0x2d1   : > { %1163 = vst.msk [vmem:[%s1764_s25 + $0xa8] sm:$0xff] %vm1141_vm2, %v1098_v18 }
 0x2d3   : > { %v1470_v19 = vpop.f32.mrb[40].mxu0 }
 0x2d4   : > { %v1119_v20 = vadd.f32 %v1470_v19, %v1757_v36  ;;  %v1110_v21 = vpop.f32.mrb[41].mxu0 }
 0x2d5   : > { %v1111_v22 = vadd.f32 %v1757_v36, %v1110_v21  ;;  %v1471_v23 = vpop.f32.mrb[42].mxu0 }
 0x2d6   : > { %1168 = vst.msk [vmem:[%s1764_s25 + $0xd0] sm:$0xff] %vm1141_vm2, %v1119_v20  ;;  %v1122_v24 = vadd.f32 %v1471_v23, %v1757_v36  ;;  %v1113_v25 = vpop.f32.mrb[43].mxu0 }
 0x2d7   : > { %1166 = vst.msk [vmem:[%s1764_s25 + $0xc0] sm:$0xff] %vm1141_vm2, %v1111_v22  ;;  %v1114_v26 = vadd.f32 %v1757_v36, %v1113_v25 }
 0x2d8   : > { %1169 = vst.msk [vmem:[%s1764_s25 + $0xd8] sm:$0xff] %vm1141_vm2, %v1122_v24 }
 0x2d9   : > { %1167 = vst.msk [vmem:[%s1764_s25 + $0xc8] sm:$0xff] %vm1141_vm2, %v1114_v26 }
 0x2db   : > { %v1474_v27 = vpop.f32.mrb[44].mxu0 }
 0x2dc   : > { %v1135_v28 = vadd.f32 %v1474_v27, %v1757_v36  ;;  %v1126_v29 = vpop.f32.mrb[45].mxu0 }
 0x2dd   : > { %v1127_v30 = vadd.f32 %v1757_v36, %v1126_v29  ;;  %v1475_v31 = vpop.f32.mrb[46].mxu0 }
 0x2de   : > { %1172 = vst.msk [vmem:[%s1764_s25 + $0xf0] sm:$0xff] %vm1141_vm2, %v1135_v28  ;;  %v1138_v33 = vadd.f32 %v1475_v31, %v1757_v36  ;;  %v1129_v34 = vpop.f32.mrb[47].mxu0 }
 0x2df   : > { %1170 = vst.msk [vmem:[%s1764_s25 + $0xe0] sm:$0xff] %vm1141_vm2, %v1127_v30  ;;  %v1130_v35 = vadd.f32 %v1757_v36, %v1129_v34 }
 0x2e0   : > { %1173 = vst.msk [vmem:[%s1764_s25 + $0xf8] sm:$0xff] %vm1141_vm2, %v1138_v33 }
 0x2e1   : > { %1171 = vst.msk [vmem:[%s1764_s25 + $0xe8] sm:$0xff] %vm1141_vm2, %v1130_v35 }
 0x2e2 PF: > { %s17_s24 = sadd.s32 1, %s1508_s24  }
 0x2e3   : > { %p14_p4 = scmp.ge.s32.totalorder %s17_s24, 4  }
 0x2e5   :  { %16 = sbr.rel (!%p14_p4) target bundleno = 1 (0x1), region = 78 }

</bundles_post_ra>
